<compile_context>
chip_gen: v7x
topology: tpu7x:2x2x1
jax: 0.10.0
libtpu: 0.0.40
codegen_flags: <defaults>
</compile_context>

<pallas_src>
import functools

import jax
import jax.numpy as jnp
from jax import lax
from jax.experimental import pallas as pl
from jax.experimental.pallas import tpu as pltpu


# ----------------------------------------------------------------------------- #
# helpers
# ----------------------------------------------------------------------------- #
def _round_up(x, m):
    return -(-x // m) * m


def _pick_row_tile(m, cap=512):
    mp8 = _round_up(m, 8)
    if mp8 <= cap:
        return mp8, mp8
    return cap, _round_up(m, cap)


def _apply_act(y, act):
    if act == 'relu':
        return jnp.maximum(y, 0.0)
    if act == 'leaky':
        return jnp.where(y > 0, y, 0.1 * y)
    if act == 'sigmoid':
        return 1.0 / (1.0 + jnp.exp(-y))
    return y


# ----------------------------------------------------------------------------- #
# Pallas kernels
# ----------------------------------------------------------------------------- #
def _matmul_kernel(a_ref, b_ref, bias_ref, o_ref, acc_ref, *, act):
    @pl.when(pl.program_id(2) == 0)
    def _():
        acc_ref[...] = jnp.zeros_like(acc_ref)

    acc_ref[...] += jnp.dot(a_ref[...], b_ref[...],
                            preferred_element_type=jnp.float32)

    @pl.when(pl.program_id(2) == pl.num_programs(2) - 1)
    def _():
        y = acc_ref[...] + bias_ref[...]
        y = _apply_act(y, act)
        o_ref[...] = y.astype(o_ref.dtype)


@functools.partial(jax.jit, static_argnames=('tm', 'tn', 'tk', 'act'))
def _matmul_padded(a, b, bias, *, tm, tn, tk, act):
    Mp, Kp = a.shape
    _, Np = b.shape
    return pl.pallas_call(
        functools.partial(_matmul_kernel, act=act),
        out_shape=jax.ShapeDtypeStruct((Mp, Np), jnp.float32),
        grid_spec=pltpu.PrefetchScalarGridSpec(
            num_scalar_prefetch=0,
            grid=(Mp // tm, Np // tn, Kp // tk),
            in_specs=[pl.BlockSpec((tm, tk), lambda i, j, k: (i, k)),
                      pl.BlockSpec((tk, tn), lambda i, j, k: (k, j)),
                      pl.BlockSpec((1, tn), lambda i, j, k: (0, j))],
            out_specs=pl.BlockSpec((tm, tn), lambda i, j, k: (i, j)),
            scratch_shapes=[pltpu.VMEM((tm, tn), jnp.float32)]),
        compiler_params=pltpu.CompilerParams(
            dimension_semantics=("parallel", "parallel", "arbitrary")),
    )(a, b, bias)


def matmul_pallas(a, b, bias=None, act='linear'):
    """(M,K) @ (K,N) on the MXU: bf16 operands, f32 accumulation, fused bias+act epilogue."""
    M, K = a.shape
    _, N = b.shape
    a = a.astype(jnp.bfloat16)
    b = b.astype(jnp.bfloat16)

    mp8 = _round_up(M, 8)
    if mp8 >= 256:
        tm, Mp = 256, _round_up(M, 256)
    else:
        tm, Mp = mp8, mp8

    np128 = _round_up(N, 128)
    if np128 >= 256:
        tn, Np = 256, _round_up(N, 256)
    else:
        tn, Np = np128, np128

    Kp = _round_up(K, 128)
    tk = 128
    for cand in (512, 384, 256):
        if Kp % cand == 0:
            tk = cand
            break

    if (Mp, Kp) != (M, K):
        a = jnp.pad(a, ((0, Mp - M), (0, Kp - K)))
    if (Kp, Np) != (K, N):
        b = jnp.pad(b, ((0, Kp - K), (0, Np - N)))
    if bias is None:
        bias_p = jnp.zeros((1, Np), jnp.float32)
    else:
        bias_p = jnp.pad(bias.astype(jnp.float32).reshape(1, N),
                         ((0, 0), (0, Np - N)))
    out = _matmul_padded(a, b, bias_p, tm=tm, tn=tn, tk=tk, act=act)
    return out[:M, :N]


def _affine_act_kernel(x_ref, s_ref, t_ref, o_ref, *, act):
    y = x_ref[...] * s_ref[...] + t_ref[...]
    o_ref[...] = _apply_act(y, act)


@functools.partial(jax.jit, static_argnames=('tm', 'act'))
def _affine_act_padded(x2, s, t, *, tm, act):
    Mp, C = x2.shape
    return pl.pallas_call(
        functools.partial(_affine_act_kernel, act=act),
        out_shape=jax.ShapeDtypeStruct((Mp, C), jnp.float32),
        grid_spec=pltpu.PrefetchScalarGridSpec(
            num_scalar_prefetch=0,
            grid=(Mp // tm,),
            in_specs=[pl.BlockSpec((tm, C), lambda i: (i, 0)),
                      pl.BlockSpec((1, C), lambda i: (0, 0)),
                      pl.BlockSpec((1, C), lambda i: (0, 0))],
            out_specs=pl.BlockSpec((tm, C), lambda i: (i, 0))),
        compiler_params=pltpu.CompilerParams(
            dimension_semantics=("parallel",)),
    )(x2, s, t)


def affine_act_rows(x2, scale, shift, act):
    """Per-channel y = x*scale + shift (+act) on an (M, C) view, row-tiled & pipelined."""
    M, C = x2.shape
    r = 1
    if C < 128 and 128 % C == 0 and M % (128 // C) == 0:
        r = 128 // C                       # fold small C into lane-dense 128 columns
    if r > 1:
        x2 = x2.reshape(M // r, C * r)
        scale = jnp.tile(scale, r)
        shift = jnp.tile(shift, r)
    Mr, Cr = x2.shape
    tm, Mp = _pick_row_tile(Mr)
    if Mp != Mr:
        x2 = jnp.pad(x2, ((0, Mp - Mr), (0, 0)))
    y = _affine_act_padded(x2.astype(jnp.float32),
                           scale.reshape(1, Cr).astype(jnp.float32),
                           shift.reshape(1, Cr).astype(jnp.float32),
                           tm=tm, act=act)
    y = y[:Mr]
    if r > 1:
        y = y.reshape(M, C)
    return y


def _ln_kernel(x_ref, g_ref, b_ref, o_ref):
    x = x_ref[...]
    mean = jnp.mean(x, axis=1, keepdims=True)
    var = jnp.mean(jnp.square(x - mean), axis=1, keepdims=True)
    o_ref[...] = (x - mean) * lax.rsqrt(var + 1e-5) * g_ref[...] + b_ref[...]


@functools.partial(jax.jit, static_argnames=('tm',))
def _ln_padded(x2, g, b, *, tm):
    Mp, D = x2.shape
    return pl.pallas_call(
        _ln_kernel,
        out_shape=jax.ShapeDtypeStruct((Mp, D), jnp.float32),
        grid_spec=pltpu.PrefetchScalarGridSpec(
            num_scalar_prefetch=0,
            grid=(Mp // tm,),
            in_specs=[pl.BlockSpec((tm, D), lambda i: (i, 0)),
                      pl.BlockSpec((1, D), lambda i: (0, 0)),
                      pl.BlockSpec((1, D), lambda i: (0, 0))],
            out_specs=pl.BlockSpec((tm, D), lambda i: (i, 0))),
        compiler_params=pltpu.CompilerParams(
            dimension_semantics=("parallel",)),
    )(x2, g, b)


def layernorm_rows(x2, g, b):
    M, D = x2.shape
    tm, Mp = _pick_row_tile(M)
    if Mp != M:
        x2 = jnp.pad(x2, ((0, Mp - M), (0, 0)))
    y = _ln_padded(x2.astype(jnp.float32),
                   g.reshape(1, D).astype(jnp.float32),
                   b.reshape(1, D).astype(jnp.float32), tm=tm)
    return y[:M]


# ----------------------------------------------------------------------------- #
# NHWC conv / BN / pooling glue built on the Pallas kernels
# ----------------------------------------------------------------------------- #
def conv2d(x, w, b=None, stride=1, padding=0, dilation=1, act='linear'):
    """NHWC conv via (bf16) im2col + Pallas MXU matmul with fused bias+activation.
    x: (N,H,W,Cin) f32; w: PyTorch layout (Cout,Cin,kh,kw)."""
    N, H, W, C = x.shape
    Cout, Cin, kh, kw = w.shape
    s, p, d = stride, padding, dilation
    Ho = (H + 2 * p - d * (kh - 1) - 1) // s + 1
    Wo = (W + 2 * p - d * (kw - 1) - 1) // s + 1

    xb = x.astype(jnp.bfloat16)
    if kh == 1 and kw == 1 and p == 0:
        if s != 1:
            xb = xb[:, ::s, ::s, :]
        A = xb.reshape(N * Ho * Wo, C)
    else:
        xp = jnp.pad(xb, ((0, 0), (p, p), (p, p), (0, 0)))
        cols = []
        for i in range(kh):
            for j in range(kw):
                patch = lax.slice(xp,
                                  (0, i * d, j * d, 0),
                                  (N, i * d + (Ho - 1) * s + 1,
                                   j * d + (Wo - 1) * s + 1, C),
                                  (1, s, s, 1))
                cols.append(patch)                       # (N, Ho, Wo, C)
        A = jnp.concatenate(cols, axis=-1).reshape(N * Ho * Wo, kh * kw * C)
    Wm = w.transpose(2, 3, 1, 0).reshape(kh * kw * Cin, Cout)
    y = matmul_pallas(A, Wm, bias=b, act=act)
    return y.reshape(N, Ho, Wo, Cout)


def linear(x, w, b=None, act='linear'):
    """x:(M,K) @ w.T, w in PyTorch (out,in) layout.  Tiny heads go through XLA."""
    n_out = w.shape[0]
    if n_out < 16:                                        # lm*/ls*/lout heads
        y = jnp.dot(x, w.T)
        if b is not None:
            y = y + b[None, :]
        return _apply_act(y, act)
    return matmul_pallas(x, w.T, bias=b, act=act)


def bn_act_nhwc(x, gamma, beta, act='linear'):
    """BatchNorm (batch statistics) + activation: stats via one XLA column reduction,
    normalization+affine+act in a row-tiled Pallas kernel."""
    N, H, W, C = x.shape
    x2 = x.reshape(N * H * W, C)
    mean = jnp.mean(x2, axis=0)
    var = jnp.var(x2, axis=0)
    scale = gamma * lax.rsqrt(var + 1e-5)
    shift = beta - mean * scale
    y = affine_act_rows(x2, scale, shift, act)
    return y.reshape(N, H, W, C)


def maxpool_3x3_s2_p1(x):                                 # NHWC
    return lax.reduce_window(x, -jnp.inf, lax.max,
                             window_dimensions=(1, 3, 3, 1),
                             window_strides=(1, 2, 2, 1),
                             padding=((0, 0), (1, 1), (1, 1), (0, 0)))


def upsample_bilinear_2x_align(x):                        # NHWC
    N, H, W, C = x.shape
    Ho, Wo = 2 * H, 2 * W

    def coords(out, inp):
        if out == 1 or inp == 1:
            return jnp.zeros((out,), jnp.float32)
        return jnp.arange(out, dtype=jnp.float32) * (inp - 1) / (out - 1)

    ys, xs = coords(Ho, H), coords(Wo, W)
    y0 = jnp.floor(ys).astype(jnp.int32)
    x0 = jnp.floor(xs).astype(jnp.int32)
    y1 = jnp.minimum(y0 + 1, H - 1)
    x1 = jnp.minimum(x0 + 1, W - 1)
    wy = (ys - y0)[:, None, None]
    wx = (xs - x0)[None, :, None]
    v00 = x[:, y0[:, None], x0[None, :], :]
    v01 = x[:, y0[:, None], x1[None, :], :]
    v10 = x[:, y1[:, None], x0[None, :], :]
    v11 = x[:, y1[:, None], x1[None, :], :]
    return (v00 * (1 - wy) * (1 - wx) + v01 * (1 - wy) * wx
            + v10 * wy * (1 - wx) + v11 * wy * wx)


def l2_normalize(x, eps=1e-12):
    n = jnp.sqrt(jnp.sum(x * x, axis=1, keepdims=True))
    return x / jnp.maximum(n, eps)


# ----------------------------------------------------------------------------- #
# Parameter construction (deterministic, synthetic)
# ----------------------------------------------------------------------------- #
class PGen:
    def __init__(self, seed=0):
        self.key = jax.random.PRNGKey(seed)
        self.c = 0

    def normal(self, shape, scale=0.05):
        self.c += 1
        return scale * jax.random.normal(jax.random.fold_in(self.key, self.c),
                                         shape, jnp.float32)

    def zeros(self, shape):
        return jnp.zeros(shape, jnp.float32)

    def ones(self, shape):
        return jnp.ones(shape, jnp.float32)


def make_cba(pg, cin, cout, k):
    return dict(w=pg.normal((cout, cin, k, k)),
                g=pg.ones((cout,)), b=pg.zeros((cout,)), k=k)


def conv_bn_act(x, p, act, stride=1):
    pad = (p['k'] - 1) // 2
    y = conv2d(x, p['w'], None, stride, pad)
    return bn_act_nhwc(y, p['g'], p['b'], act)


def make_gru(pg, cin, cout):
    return dict(ga_w=pg.normal((1, 2, 3, 3)),
                a1=make_cba(pg, cin, cin, 1),
                a2=make_cba(pg, cin, cin, 1),
                a3_w=pg.normal((cout, cin, 1, 1)),
                a3_b=pg.zeros((cout,)))


def make_mrg(pg, cin, cmid):
    return dict(conv_u=make_cba(pg, cin, cmid, 1),
                d0_w=pg.normal((cmid, cmid, 3, 3)), d0_b=pg.zeros((cmid,)),
                d1_w=pg.normal((cmid, cmid, 3, 3)), d1_b=pg.zeros((cmid,)),
                d3_w=pg.normal((cmid, cmid, 3, 3)), d3_b=pg.zeros((cmid,)),
                c11_w=pg.normal((cmid, cmid, 1, 1)), c11_b=pg.zeros((cmid,)),
                n1=make_cba(pg, cmid, cmid, 1), n2=make_cba(pg, cmid, cmid, 1),
                n3=make_cba(pg, cmid, cmid, 1), n4=make_cba(pg, cmid, cmid, 1),
                out_g=pg.ones((cmid,)), out_b=pg.zeros((cmid,)),
                gru1=make_gru(pg, cmid, cmid), gru2=make_gru(pg, cmid, cmid),
                gru3=make_gru(pg, cmid, cmid), gru4=make_gru(pg, cmid, cmid))


def make_basic_block(pg, cin, planes, stride):
    p = dict(stride=stride,
             c1_w=pg.normal((planes, cin, 3, 3)),
             bn1_g=pg.ones((planes,)), bn1_b=pg.zeros((planes,)),
             c2_w=pg.normal((planes, planes, 3, 3)),
             bn2_g=pg.ones((planes,)), bn2_b=pg.zeros((planes,)))
    if stride != 1 or cin != planes:
        p['sc_w'] = pg.normal((planes, cin, 1, 1))
        p['sc_g'] = pg.ones((planes,))
        p['sc_b'] = pg.zeros((planes,))
    return p


def make_vit(pg, dim, depth=6, heads=9, dim_head=64, mlp_dim=1024,
             channels=768, num_patches=49):
    inner = heads * dim_head
    layers = []
    for _ in range(depth):
        layers.append(dict(
            ln1_g=pg.ones((dim,)), ln1_b=pg.zeros((dim,)),
            qkv_w=pg.normal((inner * 3, dim)),
            out_w=pg.normal((dim, inner)), out_b=pg.zeros((dim,)),
            ln2_g=pg.ones((dim,)), ln2_b=pg.zeros((dim,)),
            ff1_w=pg.normal((mlp_dim, dim)), ff1_b=pg.zeros((mlp_dim,)),
            ff2_w=pg.normal((dim, mlp_dim)), ff2_b=pg.zeros((dim,))))
    return dict(emb_w=pg.normal((dim, channels)), emb_b=pg.zeros((dim,)),
                cls=pg.normal((1, 1, dim)), pos=pg.normal((1, num_patches + 1, dim)),
                layers=layers,
                lnf_g=pg.ones((dim,)), lnf_b=pg.zeros((dim,)),
                heads=heads, dim_head=dim_head)


def make_resnet(pg, num_blocks=(1, 1, 1, 1), dim=768, num_classes=10):
    p = {}
    p['conv1_w'] = pg.normal((64, 3, 7, 7))
    p['bn1_g'] = pg.ones((64,))
    p['bn1_b'] = pg.zeros((64,))
    in_planes = 64
    for li, (planes, nb, stride) in enumerate(
            zip([64, 128, 256, 512], num_blocks, [1, 2, 2, 2]), start=1):
        strides = [stride] + [1] * (nb - 1)
        blocks = []
        for s in strides:
            blocks.append(make_basic_block(pg, in_planes, planes, s))
            in_planes = planes
        p[f'layer{li}'] = blocks
    p['mrg4'] = make_mrg(pg, 512, 256)
    p['mrg3'] = make_mrg(pg, 256, 256)
    p['mrg2'] = make_mrg(pg, 128, 256)
    p['ff_w'] = pg.normal((768, 768, 4, 4))
    p['ff_b'] = pg.zeros((768,))
    p['vit'] = make_vit(pg, dim, depth=6)
    p['lm1_w'] = pg.normal((num_classes, dim)); p['lm1_b'] = pg.zeros((num_classes,))
    p['ls1_w'] = pg.normal((1, dim));           p['ls1_b'] = pg.zeros((1,))
    p['lm2_w'] = pg.normal((num_classes, 768)); p['lm2_b'] = pg.zeros((num_classes,))
    p['ls2_w'] = pg.normal((1, 768));           p['ls2_b'] = pg.zeros((1,))
    p['lm3_w'] = pg.normal((num_classes, 512)); p['lm3_b'] = pg.zeros((num_classes,))
    p['ls3_w'] = pg.normal((1, 512));           p['ls3_b'] = pg.zeros((1,))
    p['lout_w'] = pg.normal((num_classes, num_classes))
    p['lout_b'] = pg.zeros((num_classes,))
    return p


# ----------------------------------------------------------------------------- #
# Forward pass (all activations NHWC)
# ----------------------------------------------------------------------------- #
def spatial_attention(x, w):
    avg = jnp.mean(x, axis=-1, keepdims=True)
    mx = jnp.max(x, axis=-1, keepdims=True)
    cat = jnp.concatenate([avg, mx], axis=-1)
    return conv2d(cat, w, None, 1, 1, act='sigmoid')      # sigmoid fused in epilogue


def conv_gru(x_t, p):
    ga1 = spatial_attention(x_t, p['ga_w'])
    x_c = ga1 * x_t
    x_b = conv_bn_act(x_c, p['a1'], 'leaky')
    x_b = x_b * (1.0 - ga1)
    x_t = conv_bn_act(x_b + x_c, p['a2'], 'leaky') + x_t
    return conv2d(x_t, p['a3_w'], p['a3_b'], 1, 0)         # bias fused


def mrg_block(x, p):
    relu = lambda z: jnp.maximum(z, 0.0)
    x = conv_bn_act(x, p['conv_u'], 'leaky')
    d0 = conv2d(x, p['d0_w'], p['d0_b'], 1, 1, 1)           # reused pre-relu -> no fused act

    x_t1 = conv_bn_act(relu(d0), p['n1'], 'leaky')
    y1 = conv_gru(x_t1, p['gru1'])

    d1_x = conv2d(x, p['d1_w'], p['d1_b'], 1, 3, 3)
    x_t2 = conv_bn_act(conv2d(d1_x, p['c11_w'], p['c11_b'], 1, 0, act='relu'),
                       p['n2'], 'leaky')
    y2 = conv_gru(x_t2, p['gru2'])

    d1_d0 = conv2d(d0, p['d1_w'], p['d1_b'], 1, 3, 3)
    x_t3 = conv_bn_act(conv2d(d1_d0, p['c11_w'], p['c11_b'], 1, 0, act='relu'),
                       p['n3'], 'leaky')
    y3 = conv_gru(x_t3, p['gru3'])

    d3 = conv2d(d1_d0, p['d3_w'], p['d3_b'], 1, 5, 5)
    x_t4 = conv_bn_act(conv2d(d3, p['c11_w'], p['c11_b'], 1, 0, act='relu'),
                       p['n4'], 'leaky')
    y4 = conv_gru(x_t4, p['gru4'])

    return bn_act_nhwc(x + y1 + y2 + y3 + y4, p['out_g'], p['out_b'], 'linear')


def basic_block(x, p):
    out = conv2d(x, p['c1_w'], None, p['stride'], 1)
    out = bn_act_nhwc(out, p['bn1_g'], p['bn1_b'], 'relu')
    out = conv2d(out, p['c2_w'], None, 1, 1)
    out = bn_act_nhwc(out, p['bn2_g'], p['bn2_b'], 'linear')
    if 'sc_w' in p:
        sc = conv2d(x, p['sc_w'], None, p['stride'], 0)
        sc = bn_act_nhwc(sc, p['sc_g'], p['sc_b'], 'linear')
    else:
        sc = x
    return jnp.maximum(out + sc, 0.0)


def attention(x, lp, heads, dim_head):
    B, Nt, D = x.shape
    inner = heads * dim_head
    qkv = linear(x.reshape(B * Nt, D), lp['qkv_w'], None)
    qkv = qkv.reshape(B, Nt, 3, heads, dim_head).transpose(2, 0, 3, 1, 4)
    q, k, v = qkv[0], qkv[1], qkv[2]                       # (B, h, Nt, dh)
    scale = dim_head ** -0.5
    attn = jax.nn.softmax(jnp.einsum('bhid,bhjd->bhij', q, k) * scale, axis=-1)
    o = jnp.einsum('bhij,bhjd->bhid', attn, v)
    o = o.transpose(0, 2, 1, 3).reshape(B * Nt, inner)
    o = linear(o, lp['out_w'], lp['out_b'])
    return o.reshape(B, Nt, D)


def vit_forward(img, p, dim):
    """img: NHWC feature map (B, H, W, C)."""
    B, H, W, C = img.shape
    x = linear(img.reshape(B * H * W, C), p['emb_w'], p['emb_b']).reshape(B, H * W, dim)
    n = H * W
    cls = jnp.broadcast_to(p['cls'], (B, 1, dim))
    x = jnp.concatenate([cls, x], axis=1)
    x = x + p['pos'][:, :n + 1]
    # dropout -> identity (eval)
    T = n + 1
    for lp in p['layers']:
        h = layernorm_rows(x.reshape(B * T, dim), lp['ln1_g'], lp['ln1_b']).reshape(B, T, dim)
        x = attention(h, lp, p['heads'], p['dim_head']) + x
        h = layernorm_rows(x.reshape(B * T, dim), lp['ln2_g'], lp['ln2_b'])
        ff = linear(h, lp['ff1_w'], lp['ff1_b'])
        ff = jax.nn.gelu(ff, approximate=False)
        ff = linear(ff, lp['ff2_w'], lp['ff2_b'])
        x = ff.reshape(B, T, dim) + x
    x = x[:, 0]                                            # pool='cls'
    return layernorm_rows(x, p['lnf_g'], p['lnf_b'])


def resnet_forward(x, p, dim=768):
    x = x.transpose(0, 2, 3, 1)                            # NCHW -> NHWC once
    out = conv2d(x, p['conv1_w'], None, 2, 3)
    out = bn_act_nhwc(out, p['bn1_g'], p['bn1_b'], 'relu')
    out = maxpool_3x3_s2_p1(out)
    for blk in p['layer1']:
        out = basic_block(out, blk)
    for blk in p['layer2']:
        out = basic_block(out, blk)
    out2 = out
    for blk in p['layer3']:
        out = basic_block(out, blk)
    out3 = out
    for blk in p['layer4']:
        out = basic_block(out, blk)
    out4 = out

    m4 = mrg_block(out4, p['mrg4'])
    m3 = mrg_block(out3, p['mrg3'])
    m2 = mrg_block(out2, p['mrg2'])

    fusion_f = jnp.concatenate(
        [upsample_bilinear_2x_align(m4), m3, maxpool_3x3_s2_p1(m2)], axis=-1)
    fusion_ff = conv2d(fusion_f, p['ff_w'], p['ff_b'], stride=4, padding=1)

    head1 = vit_forward(fusion_ff, p['vit'], dim)
    class1 = linear(head1, p['lm1_w'], p['lm1_b'])
    score1 = jax.nn.sigmoid(linear(head1, p['ls1_w'], p['ls1_b']))

    head2 = jnp.mean(fusion_f, axis=(1, 2))
    class2 = linear(head2, p['lm2_w'], p['lm2_b'])
    score2 = jax.nn.sigmoid(linear(head2, p['ls2_w'], p['ls2_b']))

    head3 = jnp.mean(out4, axis=(1, 2))
    class3 = linear(head3, p['lm3_w'], p['lm3_b'])
    score3 = jax.nn.sigmoid(linear(head3, p['ls3_w'], p['ls3_b']))

    num = (score1 * l2_normalize(class1)
           + score2 * l2_normalize(class2)
           + score3 * l2_normalize(class3))
    out = num / (score2 + score3 + score1 + 1e-6)
    out = linear(out, p['lout_w'], p['lout_b'])
    return out, (class1, score1), (class2, score2), (class3, score3)


# ----------------------------------------------------------------------------- #
if __name__ == "__main__":
    key = jax.random.PRNGKey(0)
    # small but structurally valid input: B=2, 3 channels, 64x64 spatial
    x = jax.random.normal(key, (2, 3, 64, 64), jnp.float32)

    pg = PGen(seed=0)
    params = make_resnet(pg, num_blocks=(1, 1, 1, 1), dim=768, num_classes=10)

    outputs = resnet_forward(x, params, dim=768)
    jax.block_until_ready(outputs)

    out, (c1, s1), (c2, s2), (c3, s3) = outputs
    assert out.shape == (2, 10) and c1.shape == (2, 10) and s1.shape == (2, 1)
    assert c2.shape == (2, 10) and s2.shape == (2, 1)
    assert c3.shape == (2, 10) and s3.shape == (2, 1)
    assert all(bool(jnp.all(jnp.isfinite(t))) for t in (out, c1, s1, c2, s2, c3, s3))
    print("KERNEL_OK")
</pallas_src>

<mosaic_0001>
module attributes {stable_mosaic.version = 11 : i64} {
  func.func @_matmul_kernel(%arg0: i32, %arg1: i32, %arg2: i32, %arg3: memref<256x256xbf16, #tpu.memory_space<vmem>>, %arg4: memref<256x128xbf16, #tpu.memory_space<vmem>>, %arg5: memref<1x128xf32, #tpu.memory_space<vmem>>, %arg6: memref<256x128xf32, #tpu.memory_space<vmem>>, %arg7: memref<256x128xf32, #tpu.memory_space<vmem>>) attributes {dimension_semantics = [#tpu.dimension_semantics<parallel>, #tpu.dimension_semantics<parallel>, #tpu.dimension_semantics<arbitrary>], iteration_bounds = array<i64: 8, 1, 1>, scalar_prefetch = 0 : i64, scratch_operands = 1 : i64, tpu.core_type = #tpu.core_type<tc>, window_params = [{transform_indices = @transform_0, window_bounds = array<i64: 256, 256>}, {transform_indices = @transform_1, window_bounds = array<i64: 256, 128>}, {transform_indices = @transform_2, window_bounds = array<i64: 1, 128>}, {transform_indices = @transform_3, window_bounds = array<i64: 256, 128>}]} {
    %c0_i32 = arith.constant 0 : i32
    %0 = arith.cmpi eq, %arg2, %c0_i32 : i32
    %1 = arith.extui %0 : i1 to i32
    %c0_i32_0 = arith.constant 0 : i32
    %2 = arith.cmpi ne, %1, %c0_i32_0 : i32
    scf.if %2 {
      %cst_10 = arith.constant 0.000000e+00 : f32
      %12 = vector.broadcast %cst_10 : f32 to vector<256x128xf32>
      %c0_11 = arith.constant 0 : index
      %c0_12 = arith.constant 0 : index
      %13 = vector.load %arg7[%c0_11, %c0_12] : memref<256x128xf32, #tpu.memory_space<vmem>>, vector<256x128xf32>
      tpu.vector_store %arg7[%c0_11, %c0_12], %12 {strides = array<i32>} : memref<256x128xf32, #tpu.memory_space<vmem>>, vector<256x128xf32>,
    } else {
    }
    %c0 = arith.constant 0 : index
    %c0_1 = arith.constant 0 : index
    %3 = vector.load %arg7[%c0, %c0_1] : memref<256x128xf32, #tpu.memory_space<vmem>>, vector<256x128xf32>
    %c0_2 = arith.constant 0 : index
    %c0_3 = arith.constant 0 : index
    %4 = vector.load %arg3[%c0_2, %c0_3] : memref<256x256xbf16, #tpu.memory_space<vmem>>, vector<256x256xbf16>
    %c0_4 = arith.constant 0 : index
    %c0_5 = arith.constant 0 : index
    %5 = vector.load %arg4[%c0_4, %c0_5] : memref<256x128xbf16, #tpu.memory_space<vmem>>, vector<256x128xbf16>
    %cst = arith.constant dense<0.000000e+00> : vector<256x128xf32>
    %6 = tpu.matmul %4, %5, %cst {dimension_numbers = #tpu.dot_dimension_numbers<[1], [0], [0], [1], [0, 0, 1, 1], [], []>} : vector<256x256xbf16>, vector<256x128xbf16>, vector<256x128xf32> -> vector<256x128xf32>
    %7 = arith.addf %3, %6 : vector<256x128xf32>
    %c0_6 = arith.constant 0 : index
    %c0_7 = arith.constant 0 : index
    %8 = vector.load %arg7[%c0_6, %c0_7] : memref<256x128xf32, #tpu.memory_space<vmem>>, vector<256x128xf32>
    tpu.vector_store %arg7[%c0_6, %c0_7], %7 {strides = array<i32>} : memref<256x128xf32, #tpu.memory_space<vmem>>, vector<256x128xf32>,
    %c0_i32_8 = arith.constant 0 : i32
    %9 = arith.cmpi eq, %arg2, %c0_i32_8 : i32
    %10 = arith.extui %9 : i1 to i32
    %c0_i32_9 = arith.constant 0 : i32
    %11 = arith.cmpi ne, %10, %c0_i32_9 : i32
    scf.if %11 {
      %c0_10 = arith.constant 0 : index
      %c0_11 = arith.constant 0 : index
      %12 = vector.load %arg7[%c0_10, %c0_11] : memref<256x128xf32, #tpu.memory_space<vmem>>, vector<256x128xf32>
      %c0_12 = arith.constant 0 : index
      %c0_13 = arith.constant 0 : index
      %13 = vector.load %arg5[%c0_12, %c0_13] : memref<1x128xf32, #tpu.memory_space<vmem>>, vector<1x128xf32>
      %14 = vector.broadcast %13 : vector<1x128xf32> to vector<256x128xf32>
      %15 = arith.addf %12, %14 : vector<256x128xf32>
      %c0_14 = arith.constant 0 : index
      %c0_15 = arith.constant 0 : index
      %16 = vector.load %arg6[%c0_14, %c0_15] : memref<256x128xf32, #tpu.memory_space<vmem>>, vector<256x128xf32>
      tpu.vector_store %arg6[%c0_14, %c0_15], %15 {strides = array<i32>} : memref<256x128xf32, #tpu.memory_space<vmem>>, vector<256x128xf32>,
    } else {
    }
    return
  }
  func.func @transform_0(%arg0: i32, %arg1: i32, %arg2: i32) -> (i32, i32) {
    %c0_i32 = arith.constant 0 : i32
    return %arg0, %arg2 : i32, i32
  }
  func.func @transform_1(%arg0: i32, %arg1: i32, %arg2: i32) -> (i32, i32) {
    %c0_i32 = arith.constant 0 : i32
    return %arg2, %arg1 : i32, i32
  }
  func.func @transform_2(%arg0: i32, %arg1: i32, %arg2: i32) -> (i32, i32) {
    %c0_i32 = arith.constant 0 : i32
    %c0_i32_0 = arith.constant 0 : i32
    return %c0_i32, %arg1 : i32, i32
  }
  func.func @transform_3(%arg0: i32, %arg1: i32, %arg2: i32) -> (i32, i32) {
    %c0_i32 = arith.constant 0 : i32
    return %arg0, %arg1 : i32, i32
  }
}

</mosaic_0001>

<bundles_post_ra>
// kernel: _matmul_padded.1
= control target key start
LH: loop header
LB: loop body
LE: loop exit
PB: predicated region body
PF: predicated region fallthrough
CT: control target
= control target key end

     0   :  { %8 = vsyncpa [#allocation4], 0  ;;  %s1953_s0 = inlined_call_operand.hbm [shape: bf16[2048,256], index: 0, kind: input, shape index: {}]   ;;  %s1954_s1 = inlined_call_operand.hbm [shape: bf16[256,128], index: 1, kind: input, shape index: {}]   ;;  %s1955_s2 = inlined_call_operand.vmem [shape: f32[1,128], index: 2, kind: input, shape index: {}]   ;;  %s1956_s3 = inlined_call_operand.hbm [shape: f32[2048,128], index: 3, kind: output, shape index: {}]  }
   0x1   :  { %10 = vsyncpa [#allocation4 + $0x1], 0 }
   0x2   :  { %11 = vsyncpa [#allocation7], 0 }
   0x3   :  { %12 = vsyncpa [#allocation5], 0 }
   0x4   :  { %14 = vsyncpa [#allocation5 + $0x1], 0  ;;  %s1626_s12 = smov 0   ;;  %s1628_s13 = smov 0  }
   0x5   :  { %s1630_s14 = smov 0   ;;  %s1632_s15 = smov 0  }
   0x6   :  { %s1634_s16 = smov 0   ;;  %s1636_s17 = smov 0  }
   0x7 LB: > { %s1109_s18 = sadd.s32 4294967295, %s1595_s17   ;;  %s1110_s19 = sadd.s32 4294967294, %s1595_s17   ;;  %s1595_s17 = sphi %s1636_s17, %s20_s17   ;;  %s1591_s16 = sphi %s1634_s16, %s1979_s16   ;;  %s1587_s15 = sphi %s1632_s15, %s1978_s15   ;;  %s1583_s14 = sphi %s1630_s14, %s1977_s14   ;;  %s1579_s13 = sphi %s1628_s13, %s1976_s13   ;;  %s1575_s12 = sphi %s1626_s12, %s1975_s12  }
   0x8   : > { %p61_p0 = scmp.ne.s32.totalorder %s1579_s13, %s1575_s12  ;;  %p1660_p1 = scmp.eq.s32.totalorder %s1109_s18, 0 }
   0x9   : > { %p1664_p2 = scmp.eq.s32.totalorder %s1109_s18, 7  ;;  %p147_p3 = scmp.eq.s32.totalorder %s1110_s19, 7 }
   0xa   : > { %s1961_s20 = scalar_select %p1660_p1, 1, 0 }
   0xb   : > { %s1962_s21 = scalar_select %p1664_p2, 1, 0 }
   0xc   : > { %p1670_p4 = por %p1660_p1, %p61_p0  ;;  %p1111_p5 = scmp.ge.s32.totalorder %s1595_s17, 1 }
   0xd   : > { %p1675_p6 = por %p147_p3, %p61_p0  ;;  %p154_p7 = scmp.lt.s32.totalorder %s1595_s17, 9 }
   0xe   : > { %s1963_s22 = scalar_select %p1670_p4, 1, 0 }
   0xf   : > { %s1964_s23 = scalar_select %p1675_p6, 1, 0 }
  0x10   : > { %p1680_p8 = pnand %p1111_p5, %p154_p7  ;;  %s1597_s25 = smov [#allocation6]  }
  0x11   : > { %s170_s26 = sshll.u32 %s1597_s25, 4  ;;  %s39_s28 = sadd.s32 1, %s1591_s16  ;;  %s171_s26 = int_to_ptr.vmem [resolvable:$true] %s170_s26 }
  0x12   : > { %s1965_s24 = scalar_select %p1680_p8, 1, 0 }
  0x13   : > { %p1316_p9 = pneg %p1680_p8  ;;  %s1451_s4 = scalar_lea.hbm %s1954_s1, 2048 }
  0x14   : > { %p1452_p11 = scmp.ne.s32.totalorder %s1954_s1, %s1451_s4  ;;  %p1458_p3 = scmp.lt.u32.totalorder %s1451_s4, %s1954_s1 }
  0x15   : > { %p1688_p10 = pnand %p1316_p9, %p1660_p1 }
  0x17   : > { %p1453_p12 = pneg %p1688_p10 }
  0x19   : > { %p1454_p13 = pnand %p1453_p12, %p1452_p11 }
  0x1b   : > { %p1455_p0 = pneg %p1454_p13 }
  0x1d   : > { %p1460_p5 = pnand %p1458_p3, %p1455_p0 }
  0x1f   : > { %1463 = shalt.err (!%p1460_p5)
}
  0x20   : > { %s1464_s9 = scalar_lea.vmem %s171_s26, 2048  ;;  %p1472_p1 = scmp.lt.s32.totalorder %s171_s26, %s171_s26 }
  0x21   : > { %p1465_p7 = scmp.ne.s32.totalorder %s171_s26, %s1464_s9  ;;  %p1473_p4 = scmp.lt.s32.totalorder %s1464_s9, %s1464_s9 }
  0x23   : > { %p1467_p9 = pnand %p1465_p7, %p1453_p12  ;;  %p1474_p8 = por %p1473_p4, %p1472_p1 }
  0x25   : > { %p1468_p6 = pneg %p1467_p9 }
  0x27   : > { %p1475_p2 = pnand %p1474_p8, %p1468_p6 }
  0x29   : > { %1478 = shalt.err (!%p1475_p2)
}
  0x2a   : > { %s1598_s10 = smov 64   ;;  %s1599_s11 = smov 4  }
  0x2b   : > { %1319 = dma.hbm_to_vmem [thread:$0]  (!%p1688_p10), %s1954_s1, 2048, %s171_s26, [#allocation7], %s1598_s10, %s1598_s10, %s1599_s11  }
  0x2c   : > { %p41_p1 = scmp.ge.s32.totalorder %s39_s28, 8  ;;  %s48_s25 = sadd.s32 1, %s1583_s14 }
  0x2d   : > { %p55_p2 = scmp.ne.s32.totalorder %s1583_s14, %s1579_s13  ;;  %p56_p4 = scmp.eq.s32.totalorder %s1595_s17, 0 }
  0x2e   : > { %s1981_s28 = smov (%p41_p1, %s39_s28), 0  ;;  %p1968_p8 = scmp.ne.s32.totalorder %s1962_s21, 0 }
  0x2f   : > { %p1715_p6 = por %p56_p4, %p55_p2  ;;  %s43_s27 = ssub.s32 %s1591_s16, %s1981_s28 }
  0x30   : > { %p1721_p11 = por %p1968_p8, %p55_p2  ;;  %p1329_p12 = scmp.lt.s32.totalorder %s1595_s17, 8 }
  0x31   : > { %p46_p10 = scmp.eq.s32.totalorder %s43_s27, 0  ;;  %s190_s26 = sand.u32 1, %s1583_s14  }
  0x32   : > { %s1115_s4 = sshll.u32 %s190_s26, 8  ;;  %s1178_s6 = sshll.u32 %s1591_s16, 12 }
  0x33   : > { %s1730_s5 = scalar_select %p46_p10, %s1583_s14, %s48_s25  }
  0x34   : > { %s1736_s9 = scalar_lea.hbm %s1953_s0, %s1178_s6  ;;  %s194_s21 = scalar_lea.vmem [#allocation3], %s1115_s4 }
  0x35   : > { %s204_s10 = sshll.u32 %s194_s21, 4  ;;  %p1742_p13 = pnand %p1329_p12, %p1715_p6  ;;  %s1738_s10 = int_to_ptr.vmem [resolvable:$true] %s204_s10 }
  0x36   : > { %s1746_s18 = scalar_lea.sflag [#allocation4], %s190_s26  ;;  %s1479_s19 = scalar_lea.hbm %s1736_s9, 4096 }
  0x37   : > { %p1480_p0 = scmp.ne.s32.totalorder %s1736_s9, %s1479_s19  ;;  %p1481_p3 = pneg %p1742_p13 }
  0x38   : > { %s1484_s29 = scalar_lea.hbm %s1953_s0, 32768  ;;  %p1485_p9 = scmp.lt.u32.totalorder %s1736_s9, %s1953_s0 }
  0x39   : > { %p1482_p5 = pnand %p1481_p3, %p1480_p0  ;;  %p1486_p1 = scmp.lt.u32.totalorder %s1484_s29, %s1479_s19 }
  0x3a   : > { %p1488_p4 = scmp.lt.u32.totalorder %s1479_s19, %s1736_s9 }
  0x3b   : > { %p1483_p7 = pneg %p1482_p5  ;;  %p1487_p2 = por %p1486_p1, %p1485_p9 }
  0x3d   : > { %p1489_p6 = por %p1488_p4, %p1487_p2 }
  0x3f   : > { %p1490_p8 = pnand %p1489_p6, %p1483_p7 }
  0x41   : > { %1493 = shalt.err (!%p1490_p8)
}
  0x42   : > { %s1494_s26 = scalar_lea.vmem %s1738_s10, 4096  ;;  %s1600_s7 = smov [#allocation3]  }
  0x43   : > { %p1495_p12 = scmp.ne.s32.totalorder %s1738_s10, %s1494_s26  ;;  %s1499_s8 = sshll.u32 %s1600_s7, 4  ;;  %s1500_s8 = int_to_ptr.vmem [resolvable:$false] %s1499_s8 }
  0x44   : > { %s1501_s21 = scalar_lea.vmem %s1500_s8, 8192  ;;  %p1502_p5 = scmp.lt.s32.totalorder %s1738_s10, %s1500_s8 }
  0x45   : > { %p1497_p10 = pnand %p1495_p12, %p1481_p3  ;;  %p1503_p9 = scmp.lt.s32.totalorder %s1501_s21, %s1494_s26 }
  0x47   : > { %p1498_p0 = pneg %p1497_p10  ;;  %p1504_p1 = por %p1503_p9, %p1502_p5 }
  0x49   : > { %p1505_p2 = pnand %p1504_p1, %p1498_p0 }
  0x4b   : > { %1508 = shalt.err (!%p1505_p2)
}
  0x4c   : > { %s1601_s19 = smov 128   ;;  %s1602_s25 = smov 8  }
  0x4d   : > { %1323 = dma.hbm_to_vmem [thread:$0]  (!%p1742_p13), %s1736_s9, 4096, %s1738_s10, %s1746_s18, %s1601_s19, %s1601_s19, %s1602_s25  }
  0x4e   : > { %p1971_p3 = scmp.ne.s32.totalorder %s1965_s24, 0 }
  0x4f   : > { %s1777_s27 = sand.u32 (!%p1971_p3), 1, %s1579_s13   ;;  %p1972_p7 = scmp.ne.s32.totalorder (!%p1971_p3), %s1963_s22, 0 }
  0x50   : > { %216 = sbr.rel (%p1971_p3) target bundleno = 414 (0x19e), region = 32  ;;  %s1120_s29 = sshll.u32 (!%p1971_p3), %s1777_s27, 8 }
  0x51   : > { %s219_s4 = scalar_lea.sflag (!%p1971_p3), [#allocation4], %s1777_s27  ;;  %s1783_s6 = scalar_lea.vmem (!%p1971_p3), [#allocation3], %s1120_s29 }
  0x57   : > { %1562 = dma.done.wait (%p1972_p7), %s219_s4, 4096  }
  0x58   : > { %1564 = vsyncadd (%p1972_p7), %s219_s4, 4294963200  ;;  %p1973_p13 = scmp.ne.s32.totalorder %s1961_s20, 0 }
  0x5a   : > { %1566 = dma.done.wait (%p1973_p13), [#allocation7], 2048  }
  0x5b   : > { %1568 = vsyncadd (%p1973_p13), [#allocation7], 4294965248  ;;  %v1387_v0 = vld [vmem:[#allocation6 + $0x40] sm:$0xff]   ;;  %v1389_v2 = vld [vmem:[#allocation6 + $0x48] sm:$0xff]   ;;  %s1834_s24 = scalar_lea.vmem [#allocation8], %s1120_s29  ;;  %s1179_s9 = sshll.u32 %s1587_s15, 12 }
  0x5c   : > { %v1388_v1 = vld [vmem:[#allocation6] sm:$0xff]   ;;  %1180 = vmatprep.subr.bf16.mxu0 %v1387_v0  ;;  %1292 = vmatprep.subr.bf16.mxu1 %v1387_v0  ;;  %v1390_v3 = vld [vmem:[#allocation6 + $0x8] sm:$0xff]   ;;  %v1391_v4 = vld [vmem:[#allocation6 + $0x50] sm:$0xff]   ;;  %s994_s10 = sshll.u32 %s1834_s24, 4  ;;  %s1897_s26 = scalar_lea.hbm %s1956_s3, %s1179_s9  ;;  %s1899_s10 = int_to_ptr.vmem [resolvable:$true] %s994_s10 }
  0x5d   : > { %1181 = vmatpush3.bf16.msra.mxu0 %v1388_v1  ;;  %1300 = vmatpush3.bf16.msra.mxu1 %v1388_v1  ;;  %v1392_v5 = vld [vmem:[#allocation6 + $0x10] sm:$0xff]   ;;  %v1393_v6 = vld [vmem:[#allocation6 + $0x58] sm:$0xff]   ;;  %v1395_v8 = vld [vmem:[#allocation6 + $0x60] sm:$0xff]   ;;  %s980_s15 = scalar_lea.sflag [#allocation5], %s1777_s27  ;;  %s1509_s7 = scalar_lea.vmem %s1899_s10, 4096 }
  0x5e   : > { %1182 = vmatprep.subr.bf16.mxu0 %v1389_v2  ;;  %1293 = vmatprep.subr.bf16.mxu1 %v1389_v2  ;;  %v1394_v7 = vld [vmem:[#allocation6 + $0x18] sm:$0xff]   ;;  %v1396_v9 = vld [vmem:[#allocation6 + $0x20] sm:$0xff]   ;;  %v1397_v10 = vld [vmem:[#allocation6 + $0x68] sm:$0xff]   ;;  %p1510_p4 = scmp.ne.s32.totalorder %s1899_s10, %s1509_s7  ;;  %s1603_s8 = smov [#allocation8]  }
  0x5f   : > { %v1405_v11 = vld [vmem:[%s1783_s6 + $0x4] ss:$8 sps:$4 sm:$0xff]   ;;  %v1399_v14 = vld [vmem:[#allocation6 + $0x70] sm:$0xff]   ;;  %v1401_v16 = vld [vmem:[#allocation6 + $0x78] sm:$0xff]   ;;  %s1513_s21 = sshll.u32 %s1603_s8, 4  ;;  %s1514_s21 = int_to_ptr.vmem [resolvable:$false] %s1513_s21 }
  0x60   : > { %v1408_v12 = vld [vmem:[%s1783_s6 + $0x84] ss:$8 sps:$4 sm:$0xff]   ;;  %680 = vmatprep.mubr.bf16.mxu0 %v1405_v11  ;;  %v1400_v15 = vld [vmem:[#allocation6 + $0x30] sm:$0xff]   ;;  %v1402_v17 = vld [vmem:[#allocation6 + $0x38] sm:$0xff]   ;;  %p1511_p6 = pnand %p1510_p4, %p1721_p11  ;;  %s1515_s19 = scalar_lea.vmem %s1514_s21, 8192 }
  0x61   : > { %1183 = vmatpush3.bf16.msra.mxu0 %v1390_v3  ;;  %1301 = vmatpush3.bf16.msra.mxu1 %v1390_v3  ;;  %v1398_v13 = vld [vmem:[#allocation6 + $0x28] sm:$0xff]   ;;  %v1409_v20 = vld [vmem:[%s1783_s6 + $0x14] ss:$8 sps:$4 sm:$0xff]   ;;  %v1413_v22 = vld [vmem:[%s1783_s6 + $0x10] ss:$8 sps:$4 sm:$0xff]   ;;  %p1516_p12 = scmp.lt.s32.totalorder %s1899_s10, %s1514_s21  ;;  %p1517_p10 = scmp.lt.s32.totalorder %s1515_s19, %s1509_s7 }
  0x62   : > { %1184 = vmatprep.subr.bf16.mxu0 %v1391_v4  ;;  %1294 = vmatprep.subr.bf16.mxu1 %v1391_v4  ;;  %v1403_v18 = vld [vmem:[%s1783_s6] ss:$8 sps:$4 sm:$0xff]   ;;  %v1411_v21 = vld [vmem:[%s1783_s6 + $0x94] ss:$8 sps:$4 sm:$0xff]   ;;  %v1414_v23 = vld [vmem:[%s1783_s6 + $0x90] ss:$8 sps:$4 sm:$0xff]   ;;  %p1512_p8 = pneg %p1511_p6 }
  0x63   : > { %744 = vmatprep.mubr.bf16.mxu1 %v1408_v12  ;;  %v1406_v19 = vld [vmem:[%s1783_s6 + $0x80] ss:$8 sps:$4 sm:$0xff]   ;;  %v1415_v24 = vld [vmem:[%s1783_s6 + $0x24] ss:$8 sps:$4 sm:$0xff]   ;;  %v1421_v28 = vld [vmem:[%s1783_s6 + $0x34] ss:$8 sps:$4 sm:$0xff]   ;;  %p1518_p0 = por %p1517_p10, %p1516_p12 }
  0x64   : > { %v1417_v25 = vld [vmem:[%s1783_s6 + $0xa4] ss:$8 sps:$4 sm:$0xff]   ;;  %v1419_v26 = vld [vmem:[%s1783_s6 + $0x20] ss:$8 sps:$4 sm:$0xff]   ;;  %v1423_v29 = vld [vmem:[%s1783_s6 + $0xb4] ss:$8 sps:$4 sm:$0xff]  }
  0x65   : > { %1185 = vmatpush3.bf16.msra.mxu0 %v1392_v5  ;;  %1302 = vmatpush3.bf16.msra.mxu1 %v1392_v5  ;;  %v1420_v27 = vld [vmem:[%s1783_s6 + $0xa0] ss:$8 sps:$4 sm:$0xff]   ;;  %v1425_v30 = vld [vmem:[%s1783_s6 + $0x30] ss:$8 sps:$4 sm:$0xff]   ;;  %v1427_v32 = vld [vmem:[%s1783_s6 + $0x44] ss:$8 sps:$4 sm:$0xff]   ;;  %p1519_p5 = pnand %p1518_p0, %p1512_p8 }
  0x66   : > { %1186 = vmatprep.subr.bf16.mxu0 %v1393_v6  ;;  %1295 = vmatprep.subr.bf16.mxu1 %v1393_v6  ;;  %v1426_v31 = vld [vmem:[%s1783_s6 + $0xb0] ss:$8 sps:$4 sm:$0xff]   ;;  %v1429_v33 = vld [vmem:[%s1783_s6 + $0xc4] ss:$8 sps:$4 sm:$0xff]   ;;  %v1431_v34 = vld [vmem:[%s1783_s6 + $0x40] ss:$8 sps:$4 sm:$0xff]  }
  0x67   : > { %v1432_v35 = vld [vmem:[%s1783_s6 + $0xc0] ss:$8 sps:$4 sm:$0xff]   ;;  %v1433_v36 = vld [vmem:[%s1783_s6 + $0x54] ss:$8 sps:$4 sm:$0xff]   ;;  %v1437_v38 = vld [vmem:[%s1783_s6 + $0x50] ss:$8 sps:$4 sm:$0xff]  }
  0x68   : > { %v1435_v37 = vld [vmem:[%s1783_s6 + $0xd4] ss:$8 sps:$4 sm:$0xff]   ;;  %v1438_v39 = vld [vmem:[%s1783_s6 + $0xd0] ss:$8 sps:$4 sm:$0xff]   ;;  %v1439_v40 = vld [vmem:[%s1783_s6 + $0x64] ss:$8 sps:$4 sm:$0xff]  }
  0x69   : > { %1187 = vmatpush3.bf16.msra.mxu0 %v1394_v7  ;;  %1303 = vmatpush3.bf16.msra.mxu1 %v1394_v7  ;;  %v1441_v41 = vld [vmem:[%s1783_s6 + $0xe4] ss:$8 sps:$4 sm:$0xff]   ;;  %v1443_v42 = vld [vmem:[%s1783_s6 + $0x60] ss:$8 sps:$4 sm:$0xff]   ;;  %v1445_v44 = vld [vmem:[%s1783_s6 + $0x74] ss:$8 sps:$4 sm:$0xff]  }
  0x6a   : > { %1188 = vmatprep.subr.bf16.mxu0 %v1395_v8  ;;  %1296 = vmatprep.subr.bf16.mxu1 %v1395_v8  ;;  %v1444_v43 = vld [vmem:[%s1783_s6 + $0xe0] ss:$8 sps:$4 sm:$0xff]   ;;  %v1447_v45 = vld [vmem:[%s1783_s6 + $0xf4] ss:$8 sps:$4 sm:$0xff]   ;;  %v1449_v46 = vld [vmem:[%s1783_s6 + $0x70] ss:$8 sps:$4 sm:$0xff]  }
  0x6b   : > { %v1450_v47 = vld [vmem:[%s1783_s6 + $0xf0] ss:$8 sps:$4 sm:$0xff]   ;;  %v1828_v51 = vld [vmem:[%s1955_s2] ss:$0 sm:$0xff] }
  0x6d   : > { %1189 = vmatpush3.bf16.msra.mxu0 %v1396_v9  ;;  %1304 = vmatpush3.bf16.msra.mxu1 %v1396_v9 }
  0x6e   : > { %1190 = vmatprep.subr.bf16.mxu0 %v1397_v10  ;;  %1297 = vmatprep.subr.bf16.mxu1 %v1397_v10 }
  0x71   : > { %1191 = vmatpush3.bf16.msra.mxu0 %v1398_v13  ;;  %1305 = vmatpush3.bf16.msra.mxu1 %v1398_v13 }
  0x72   : > { %1192 = vmatprep.subr.bf16.mxu0 %v1399_v14  ;;  %1298 = vmatprep.subr.bf16.mxu1 %v1399_v14 }
  0x75   : > { %1193 = vmatpush3.bf16.msra.mxu0 %v1400_v15  ;;  %1306 = vmatpush3.bf16.msra.mxu1 %v1400_v15 }
  0x76   : > { %1194 = vmatprep.subr.bf16.mxu0 %v1401_v16  ;;  %1299 = vmatprep.subr.bf16.mxu1 %v1401_v16 }
  0x79   : > { %1195 = vmatpush3.bf16.msra.mxu0 %v1402_v17  ;;  %1307 = vmatpush3.bf16.msra.mxu1 %v1402_v17 }
  0x7c   : > { %681 = vmatmul.mubr.bf16.vlgmr.msra.gmra.mrb[0].mxu0 %v1403_v18  ;;  %745 = vmatmul.mubr.bf16.vlgmr.msra.gmra.mrb[0].mxu1 %v1406_v19 }
  0x7d   : > { %688 = vmatprep.mubr.bf16.mxu0 %v1409_v20  ;;  %752 = vmatprep.mubr.bf16.mxu1 %v1411_v21 }
  0x84   : > { %689 = vmatmul.mubr.bf16.gmra.mrb[4].mxu0 %v1413_v22  ;;  %753 = vmatmul.mubr.bf16.gmra.mrb[4].mxu1 %v1414_v23 }
  0x85   : > { %696 = vmatprep.mubr.bf16.mxu0 %v1415_v24  ;;  %760 = vmatprep.mubr.bf16.mxu1 %v1417_v25 }
  0x8c   : > { %697 = vmatmul.mubr.bf16.gmra.mrb[8].mxu0 %v1419_v26  ;;  %761 = vmatmul.mubr.bf16.gmra.mrb[8].mxu1 %v1420_v27 }
  0x8d   : > { %704 = vmatprep.mubr.bf16.mxu0 %v1421_v28  ;;  %768 = vmatprep.mubr.bf16.mxu1 %v1423_v29 }
  0x94   : > { %705 = vmatmul.mubr.bf16.gmra.mrb[12].mxu0 %v1425_v30  ;;  %769 = vmatmul.mubr.bf16.gmra.mrb[12].mxu1 %v1426_v31 }
  0x95   : > { %712 = vmatprep.mubr.bf16.mxu0 %v1427_v32  ;;  %776 = vmatprep.mubr.bf16.mxu1 %v1429_v33 }
  0x9c   : > { %713 = vmatmul.mubr.bf16.gmra.mrb[16].mxu0 %v1431_v34  ;;  %777 = vmatmul.mubr.bf16.gmra.mrb[16].mxu1 %v1432_v35 }
  0x9d   : > { %720 = vmatprep.mubr.bf16.mxu0 %v1433_v36  ;;  %784 = vmatprep.mubr.bf16.mxu1 %v1435_v37 }
  0xa4   : > { %721 = vmatmul.mubr.bf16.gmra.mrb[20].mxu0 %v1437_v38  ;;  %785 = vmatmul.mubr.bf16.gmra.mrb[20].mxu1 %v1438_v39 }
  0xa5   : > { %728 = vmatprep.mubr.bf16.mxu0 %v1439_v40  ;;  %792 = vmatprep.mubr.bf16.mxu1 %v1441_v41 }
  0xac   : > { %729 = vmatmul.mubr.bf16.gmra.mrb[24].mxu0 %v1443_v42  ;;  %793 = vmatmul.mubr.bf16.gmra.mrb[24].mxu1 %v1444_v43 }
  0xad   : > { %736 = vmatprep.mubr.bf16.mxu0 %v1445_v44  ;;  %800 = vmatprep.mubr.bf16.mxu1 %v1447_v45 }
  0xb4   : > { %737 = vmatmul.mubr.bf16.gmra.mrb[28].mxu0 %v1449_v46  ;;  %801 = vmatmul.mubr.bf16.gmra.mrb[28].mxu1 %v1450_v47 }
 0x14f   : > { %v1196_v48 = vpop.f32.mrb[0].mxu0  ;;  %v1244_v49 = vpop.f32.mrb[0].mxu1 }
 0x150   : > { %v1197_v50 = vpop.f32.mrb[1].mxu0  ;;  %v1245_v52 = vpop.f32.mrb[1].mxu1 }
 0x151   : > { %v1198_v53 = vadd.f32 %v1197_v50, %v1196_v48  ;;  %v1246_v54 = vadd.f32 %v1245_v52, %v1244_v49  ;;  %v1199_v55 = vpop.f32.mrb[2].mxu0  ;;  %v1247_v56 = vpop.f32.mrb[2].mxu1 }
 0x152   : > { %v1200_v57 = vpop.f32.mrb[3].mxu0  ;;  %v1248_v58 = vpop.f32.mrb[3].mxu1 }
 0x153   : > { %v915_v59 = vadd.f32 %v1198_v53, %v1828_v51  ;;  %v931_v60 = vadd.f32 %v1246_v54, %v1828_v51  ;;  %v1201_v61 = vadd.f32 %v1200_v57, %v1199_v55  ;;  %v1249_v62 = vadd.f32 %v1248_v58, %v1247_v56 }
 0x155   : > { %947 = vst [vmem:[%s1834_s24] sm:$0xff] %v915_v59  ;;  %963 = vst [vmem:[%s1834_s24 + $0x80] sm:$0xff] %v931_v60  ;;  %v916_v63 = vadd.f32 %v1201_v61, %v1828_v51  ;;  %v932_v0 = vadd.f32 %v1249_v62, %v1828_v51 }
 0x157   : > { %948 = vst [vmem:[%s1834_s24 + $0x8] sm:$0xff] %v916_v63  ;;  %964 = vst [vmem:[%s1834_s24 + $0x88] sm:$0xff] %v932_v0  ;;  %v1202_v1 = vpop.f32.mrb[4].mxu0  ;;  %v1250_v2 = vpop.f32.mrb[4].mxu1 }
 0x158   : > { %v1203_v3 = vpop.f32.mrb[5].mxu0  ;;  %v1251_v4 = vpop.f32.mrb[5].mxu1 }
 0x159   : > { %v1204_v5 = vadd.f32 %v1203_v3, %v1202_v1  ;;  %v1252_v6 = vadd.f32 %v1251_v4, %v1250_v2  ;;  %v1205_v7 = vpop.f32.mrb[6].mxu0  ;;  %v1253_v8 = vpop.f32.mrb[6].mxu1 }
 0x15a   : > { %v1206_v9 = vpop.f32.mrb[7].mxu0  ;;  %v1254_v10 = vpop.f32.mrb[7].mxu1 }
 0x15b   : > { %v917_v11 = vadd.f32 %v1204_v5, %v1828_v51  ;;  %v933_v12 = vadd.f32 %v1252_v6, %v1828_v51  ;;  %v1207_v13 = vadd.f32 %v1206_v9, %v1205_v7  ;;  %v1255_v14 = vadd.f32 %v1254_v10, %v1253_v8 }
 0x15d   : > { %949 = vst [vmem:[%s1834_s24 + $0x10] sm:$0xff] %v917_v11  ;;  %965 = vst [vmem:[%s1834_s24 + $0x90] sm:$0xff] %v933_v12  ;;  %v918_v15 = vadd.f32 %v1207_v13, %v1828_v51  ;;  %v934_v16 = vadd.f32 %v1255_v14, %v1828_v51 }
 0x15f   : > { %950 = vst [vmem:[%s1834_s24 + $0x18] sm:$0xff] %v918_v15  ;;  %966 = vst [vmem:[%s1834_s24 + $0x98] sm:$0xff] %v934_v16  ;;  %v1208_v17 = vpop.f32.mrb[8].mxu0  ;;  %v1256_v18 = vpop.f32.mrb[8].mxu1 }
 0x160   : > { %v1209_v19 = vpop.f32.mrb[9].mxu0  ;;  %v1257_v20 = vpop.f32.mrb[9].mxu1 }
 0x161   : > { %v1210_v21 = vadd.f32 %v1209_v19, %v1208_v17  ;;  %v1258_v22 = vadd.f32 %v1257_v20, %v1256_v18  ;;  %v1211_v23 = vpop.f32.mrb[10].mxu0  ;;  %v1259_v24 = vpop.f32.mrb[10].mxu1 }
 0x162   : > { %v1212_v25 = vpop.f32.mrb[11].mxu0  ;;  %v1260_v26 = vpop.f32.mrb[11].mxu1 }
 0x163   : > { %v919_v27 = vadd.f32 %v1210_v21, %v1828_v51  ;;  %v935_v28 = vadd.f32 %v1258_v22, %v1828_v51  ;;  %v1213_v29 = vadd.f32 %v1212_v25, %v1211_v23  ;;  %v1261_v30 = vadd.f32 %v1260_v26, %v1259_v24 }
 0x165   : > { %951 = vst [vmem:[%s1834_s24 + $0x20] sm:$0xff] %v919_v27  ;;  %967 = vst [vmem:[%s1834_s24 + $0xa0] sm:$0xff] %v935_v28  ;;  %v920_v31 = vadd.f32 %v1213_v29, %v1828_v51  ;;  %v936_v32 = vadd.f32 %v1261_v30, %v1828_v51 }
 0x167   : > { %952 = vst [vmem:[%s1834_s24 + $0x28] sm:$0xff] %v920_v31  ;;  %968 = vst [vmem:[%s1834_s24 + $0xa8] sm:$0xff] %v936_v32  ;;  %v1214_v33 = vpop.f32.mrb[12].mxu0  ;;  %v1262_v34 = vpop.f32.mrb[12].mxu1 }
 0x168   : > { %v1215_v35 = vpop.f32.mrb[13].mxu0  ;;  %v1263_v36 = vpop.f32.mrb[13].mxu1 }
 0x169   : > { %v1216_v37 = vadd.f32 %v1215_v35, %v1214_v33  ;;  %v1264_v38 = vadd.f32 %v1263_v36, %v1262_v34  ;;  %v1217_v39 = vpop.f32.mrb[14].mxu0  ;;  %v1265_v40 = vpop.f32.mrb[14].mxu1 }
 0x16a   : > { %v1218_v41 = vpop.f32.mrb[15].mxu0  ;;  %v1266_v42 = vpop.f32.mrb[15].mxu1 }
 0x16b   : > { %v921_v43 = vadd.f32 %v1216_v37, %v1828_v51  ;;  %v937_v44 = vadd.f32 %v1264_v38, %v1828_v51  ;;  %v1219_v45 = vadd.f32 %v1218_v41, %v1217_v39  ;;  %v1267_v46 = vadd.f32 %v1266_v42, %v1265_v40 }
 0x16d   : > { %953 = vst [vmem:[%s1834_s24 + $0x30] sm:$0xff] %v921_v43  ;;  %969 = vst [vmem:[%s1834_s24 + $0xb0] sm:$0xff] %v937_v44  ;;  %v922_v47 = vadd.f32 %v1219_v45, %v1828_v51  ;;  %v938_v48 = vadd.f32 %v1267_v46, %v1828_v51 }
 0x16f   : > { %954 = vst [vmem:[%s1834_s24 + $0x38] sm:$0xff] %v922_v47  ;;  %970 = vst [vmem:[%s1834_s24 + $0xb8] sm:$0xff] %v938_v48  ;;  %v1220_v49 = vpop.f32.mrb[16].mxu0  ;;  %v1268_v50 = vpop.f32.mrb[16].mxu1 }
 0x170   : > { %v1221_v52 = vpop.f32.mrb[17].mxu0  ;;  %v1269_v53 = vpop.f32.mrb[17].mxu1 }
 0x171   : > { %v1222_v54 = vadd.f32 %v1221_v52, %v1220_v49  ;;  %v1270_v55 = vadd.f32 %v1269_v53, %v1268_v50  ;;  %v1223_v56 = vpop.f32.mrb[18].mxu0  ;;  %v1271_v57 = vpop.f32.mrb[18].mxu1 }
 0x172   : > { %v1224_v58 = vpop.f32.mrb[19].mxu0  ;;  %v1272_v59 = vpop.f32.mrb[19].mxu1 }
 0x173   : > { %v923_v60 = vadd.f32 %v1222_v54, %v1828_v51  ;;  %v939_v61 = vadd.f32 %v1270_v55, %v1828_v51  ;;  %v1225_v62 = vadd.f32 %v1224_v58, %v1223_v56  ;;  %v1273_v63 = vadd.f32 %v1272_v59, %v1271_v57 }
 0x175   : > { %955 = vst [vmem:[%s1834_s24 + $0x40] sm:$0xff] %v923_v60  ;;  %971 = vst [vmem:[%s1834_s24 + $0xc0] sm:$0xff] %v939_v61  ;;  %v924_v0 = vadd.f32 %v1225_v62, %v1828_v51  ;;  %v940_v1 = vadd.f32 %v1273_v63, %v1828_v51 }
 0x177   : > { %956 = vst [vmem:[%s1834_s24 + $0x48] sm:$0xff] %v924_v0  ;;  %972 = vst [vmem:[%s1834_s24 + $0xc8] sm:$0xff] %v940_v1  ;;  %v1226_v2 = vpop.f32.mrb[20].mxu0  ;;  %v1274_v3 = vpop.f32.mrb[20].mxu1 }
 0x178   : > { %v1227_v4 = vpop.f32.mrb[21].mxu0  ;;  %v1275_v5 = vpop.f32.mrb[21].mxu1 }
 0x179   : > { %v1228_v6 = vadd.f32 %v1227_v4, %v1226_v2  ;;  %v1276_v7 = vadd.f32 %v1275_v5, %v1274_v3  ;;  %v1229_v8 = vpop.f32.mrb[22].mxu0  ;;  %v1277_v9 = vpop.f32.mrb[22].mxu1 }
 0x17a   : > { %v1230_v10 = vpop.f32.mrb[23].mxu0  ;;  %v1278_v11 = vpop.f32.mrb[23].mxu1 }
 0x17b   : > { %v925_v12 = vadd.f32 %v1228_v6, %v1828_v51  ;;  %v941_v13 = vadd.f32 %v1276_v7, %v1828_v51  ;;  %v1231_v14 = vadd.f32 %v1230_v10, %v1229_v8  ;;  %v1279_v15 = vadd.f32 %v1278_v11, %v1277_v9 }
 0x17d   : > { %957 = vst [vmem:[%s1834_s24 + $0x50] sm:$0xff] %v925_v12  ;;  %973 = vst [vmem:[%s1834_s24 + $0xd0] sm:$0xff] %v941_v13  ;;  %v926_v16 = vadd.f32 %v1231_v14, %v1828_v51  ;;  %v942_v17 = vadd.f32 %v1279_v15, %v1828_v51 }
 0x17f   : > { %958 = vst [vmem:[%s1834_s24 + $0x58] sm:$0xff] %v926_v16  ;;  %974 = vst [vmem:[%s1834_s24 + $0xd8] sm:$0xff] %v942_v17  ;;  %v1232_v18 = vpop.f32.mrb[24].mxu0  ;;  %v1280_v19 = vpop.f32.mrb[24].mxu1 }
 0x180   : > { %v1233_v20 = vpop.f32.mrb[25].mxu0  ;;  %v1281_v21 = vpop.f32.mrb[25].mxu1 }
 0x181   : > { %v1234_v22 = vadd.f32 %v1233_v20, %v1232_v18  ;;  %v1282_v23 = vadd.f32 %v1281_v21, %v1280_v19  ;;  %v1235_v24 = vpop.f32.mrb[26].mxu0  ;;  %v1283_v25 = vpop.f32.mrb[26].mxu1 }
 0x182   : > { %v1236_v26 = vpop.f32.mrb[27].mxu0  ;;  %v1284_v27 = vpop.f32.mrb[27].mxu1 }
 0x183   : > { %v927_v28 = vadd.f32 %v1234_v22, %v1828_v51  ;;  %v943_v29 = vadd.f32 %v1282_v23, %v1828_v51  ;;  %v1237_v30 = vadd.f32 %v1236_v26, %v1235_v24  ;;  %v1285_v31 = vadd.f32 %v1284_v27, %v1283_v25 }
 0x185   : > { %959 = vst [vmem:[%s1834_s24 + $0x60] sm:$0xff] %v927_v28  ;;  %975 = vst [vmem:[%s1834_s24 + $0xe0] sm:$0xff] %v943_v29  ;;  %v928_v32 = vadd.f32 %v1237_v30, %v1828_v51  ;;  %v944_v33 = vadd.f32 %v1285_v31, %v1828_v51 }
 0x187   : > { %960 = vst [vmem:[%s1834_s24 + $0x68] sm:$0xff] %v928_v32  ;;  %976 = vst [vmem:[%s1834_s24 + $0xe8] sm:$0xff] %v944_v33  ;;  %v1238_v34 = vpop.f32.mrb[28].mxu0  ;;  %v1286_v35 = vpop.f32.mrb[28].mxu1 }
 0x188   : > { %v1239_v36 = vpop.f32.mrb[29].mxu0  ;;  %v1287_v37 = vpop.f32.mrb[29].mxu1 }
 0x189   : > { %v1240_v38 = vadd.f32 %v1239_v36, %v1238_v34  ;;  %v1288_v39 = vadd.f32 %v1287_v37, %v1286_v35  ;;  %v1241_v40 = vpop.f32.mrb[30].mxu0  ;;  %v1289_v41 = vpop.f32.mrb[30].mxu1 }
 0x18a   : > { %v1242_v42 = vpop.f32.mrb[31].mxu0  ;;  %v1290_v43 = vpop.f32.mrb[31].mxu1 }
 0x18b   : > { %v929_v44 = vadd.f32 %v1240_v38, %v1828_v51  ;;  %v945_v45 = vadd.f32 %v1288_v39, %v1828_v51  ;;  %v1243_v46 = vadd.f32 %v1242_v42, %v1241_v40  ;;  %v1291_v47 = vadd.f32 %v1290_v43, %v1289_v41 }
 0x18d   : > { %961 = vst [vmem:[%s1834_s24 + $0x70] sm:$0xff] %v929_v44  ;;  %977 = vst [vmem:[%s1834_s24 + $0xf0] sm:$0xff] %v945_v45  ;;  %v930_v48 = vadd.f32 %v1243_v46, %v1828_v51  ;;  %v946_v49 = vadd.f32 %v1291_v47, %v1828_v51 }
 0x18f   : > { %962 = vst [vmem:[%s1834_s24 + $0x78] sm:$0xff] %v930_v48  ;;  %978 = vst [vmem:[%s1834_s24 + $0xf8] sm:$0xff] %v946_v49 }
 0x190   : > { %1522 = shalt.err (!%p1519_p5)
}
 0x191   : > { %s1523_s25 = scalar_lea.hbm %s1897_s26, 4096  ;;  %s1527_s6 = scalar_lea.hbm %s1956_s3, 32768 }
 0x192   : > { %p1524_p9 = scmp.ne.s32.totalorder %s1897_s26, %s1523_s25  ;;  %p1528_p3 = scmp.lt.u32.totalorder %s1897_s26, %s1956_s3 }
 0x193   : > { %p1529_p7 = scmp.lt.u32.totalorder %s1527_s6, %s1523_s25  ;;  %p1531_p4 = scmp.lt.u32.totalorder %s1523_s25, %s1897_s26 }
 0x194   : > { %p1525_p1 = pnand %p1524_p9, %p1721_p11 }
 0x195   : > { %p1530_p13 = por %p1529_p7, %p1528_p3 }
 0x196   : > { %p1526_p2 = pneg %p1525_p1 }
 0x197   : > { %p1532_p6 = por %p1531_p4, %p1530_p13 }
 0x199   : > { %p1533_p8 = pnand %p1532_p6, %p1526_p2 }
 0x19b   : > { %1536 = shalt.err (!%p1533_p8)
}
 0x19c   : > { %s1604_s24 = smov 128   ;;  %s1605_s9 = smov 8  }
 0x19d   : > { %1314 = dma.vmem_to_hbm [thread:$0]  (%p1721_p11), %s1899_s10, 4096, %s1897_s26, %s980_s15, %s1604_s24, %s1604_s24, %s1605_s9  }
 0x19e PF: > { %p1331_p12 = scmp.ge.s32.totalorder %s1595_s17, 2  ;;  %s1009_s11 = sand.u32 1, %s1575_s12  }
 0x19f   : > { %p1974_p10 = scmp.ne.s32.totalorder %s1964_s23, 0  ;;  %s1010_s18 = scalar_lea.sflag [#allocation5], %s1009_s11 }
 0x1a1   : > { %p1325_p0 = pnand %p1331_p12, %p1974_p10 }
 0x1a3   : > { %1570 = dma.done.wait (!%p1325_p0), %s1010_s18, 4096  }
 0x1a4   : > { %1572 = vsyncadd (!%p1325_p0), %s1010_s18, 4294963200  ;;  %s20_s17 = sadd.s32 1, %s1595_s17   ;;  %s1975_s12 = smov %s1579_s13 }
 0x1a5   : > { %p17_p5 = scmp.ge.s32.totalorder %s20_s17, 10   ;;  %s1976_s13 = smov %s1583_s14 }
 0x1a6   : > { %s1977_s14 = smov %s1730_s5  ;;  %s1978_s15 = smov %s1591_s16 }
 0x1a7   : > { %s1979_s16 = smov %s1981_s28  ;;  %19 = sbr.rel (!%p17_p5) target bundleno = 7 (0x7), region = 93 }
 0x1ae   :  { %1015 = vsyncpa [#allocation4], 1 }
 0x1af   :  { %1017 = vsyncpa [#allocation4 + $0x1], 1 }
 0x1b0   :  { %1018 = vsyncpa [#allocation7], 1 }
 0x1b1   :  { %1019 = vsyncpa [#allocation5], 1 }
 0x1b2   :  { %1021 = vsyncpa [#allocation5 + $0x1], 1 }

</bundles_post_ra>
